<compile_context>
chip_gen: v6e
topology: v6e:2x2x1
jax: 0.10.0
libtpu: 0.0.40
codegen_flags: <defaults>
</compile_context>

<pallas_src>
import jax
import jax.numpy as jnp
from jax.experimental import pallas as pl
from jax.experimental.pallas import tpu as pltpu

STATE_DIM = 8
HIDDEN = 256
ACTION_N = 4
MAX_TILE_B = 2048      # sublane-aligned batch tile; amortizes per-grid-step overhead


def cem_forward_kernel(x_ref, w1_ref, b1_ref, w2_ref, b2_ref, o_ref):
    # x_ref : (TILE_B, STATE_DIM)
    # w1_ref: (STATE_DIM, HIDDEN), b1_ref: (1, HIDDEN)
    # w2_ref: (HIDDEN, ACTION_N),  b2_ref: (1, ACTION_N)
    # o_ref : (TILE_B, ACTION_N)
    x = x_ref[...]
    h = jnp.dot(x, w1_ref[...], preferred_element_type=jnp.float32) + b1_ref[...]
    h = jnp.maximum(h, 0.0)  # ReLU
    logits = jnp.dot(h, w2_ref[...], preferred_element_type=jnp.float32) + b2_ref[...]
    o_ref[...] = logits.astype(o_ref.dtype)


def _round8(n):
    return ((n + 7) // 8) * 8


def _choose_tiling(B):
    """Pick (tile_b, grid_b) so tile_b is a multiple of 8, <= MAX_TILE_B, and
    grid_b is even for large B (lets v7x spread the 'parallel' axis over both
    TensorCores).  Small B stays a single tile."""
    b_round8 = _round8(B)
    if b_round8 <= MAX_TILE_B:
        return b_round8, 1
    grid_b = 2 * (-(-b_round8 // (2 * MAX_TILE_B)))   # even number of tiles
    tile_b = _round8(-(-b_round8 // grid_b))
    return tile_b, grid_b


def cem_forward(x, w1, b1, w2, b2):
    """Pallas wrapper: logits = relu(x @ w1 + b1) @ w2 + b2, weights stored (in, out)."""
    B = x.shape[0]

    tile_b, grid_b = _choose_tiling(B)
    b_pad = tile_b * grid_b
    x_pad = jnp.pad(x, ((0, b_pad - B), (0, 0))) if b_pad != B else x

    itemsize = 4
    cost = pl.CostEstimate(
        flops=2 * b_pad * STATE_DIM * HIDDEN + 2 * b_pad * HIDDEN * ACTION_N,
        transcendentals=0,
        bytes_accessed=itemsize * (
            b_pad * STATE_DIM                      # x
            + STATE_DIM * HIDDEN + HIDDEN          # w1, b1
            + HIDDEN * ACTION_N + ACTION_N         # w2, b2
            + b_pad * ACTION_N                     # out
        ),
    )

    out = pl.pallas_call(
        cem_forward_kernel,
        out_shape=jax.ShapeDtypeStruct((b_pad, ACTION_N), jnp.float32),
        grid=(grid_b,),
        in_specs=[
            pl.BlockSpec((tile_b, STATE_DIM), lambda i: (i, 0)),   # x: tiled over batch
            pl.BlockSpec((STATE_DIM, HIDDEN), lambda i: (0, 0)),   # w1: VMEM-resident
            pl.BlockSpec((1, HIDDEN), lambda i: (0, 0)),           # b1
            pl.BlockSpec((HIDDEN, ACTION_N), lambda i: (0, 0)),    # w2 (unpadded)
            pl.BlockSpec((1, ACTION_N), lambda i: (0, 0)),         # b2 (unpadded)
        ],
        out_specs=pl.BlockSpec((tile_b, ACTION_N), lambda i: (i, 0)),
        compiler_params=pltpu.CompilerParams(
            dimension_semantics=("parallel",),  # megacore sharding on v7x; harmless elsewhere
        ),
        cost_estimate=cost,
    )(x_pad, w1, b1, w2, b2)

    # strip batch padding only (padded rows hold relu(b1)@w2+b2 garbage, discarded here)
    return out[:B]


def init_params(key):
    """Deterministic init mimicking torch.nn.Linear defaults (uniform +/- 1/sqrt(fan_in))."""
    k1, k2, k3, k4 = jax.random.split(key, 4)
    bound1 = 1.0 / jnp.sqrt(STATE_DIM)
    bound2 = 1.0 / jnp.sqrt(HIDDEN)
    # stored as (in, out) -- transposed relative to torch's (out, in)
    w1 = jax.random.uniform(k1, (STATE_DIM, HIDDEN), jnp.float32, -bound1, bound1)
    b1 = jax.random.uniform(k2, (1, HIDDEN), jnp.float32, -bound1, bound1)
    w2 = jax.random.uniform(k3, (HIDDEN, ACTION_N), jnp.float32, -bound2, bound2)
    b2 = jax.random.uniform(k4, (1, ACTION_N), jnp.float32, -bound2, bound2)
    return w1, b1, w2, b2


def reference_forward(x, w1, b1, w2, b2):
    h = jnp.maximum(x @ w1 + b1, 0.0)
    return h @ w2 + b2


if __name__ == "__main__":
    key = jax.random.PRNGKey(0)
    kx, kx2, kp = jax.random.split(key, 3)

    w1, b1, w2, b2 = init_params(kp)

    # Small batch (single tile path).
    batch = 8
    x = jax.random.normal(kx, (batch, STATE_DIM), jnp.float32)
    logits = jax.block_until_ready(cem_forward(x, w1, b1, w2, b2))
    ref = reference_forward(x, w1, b1, w2, b2)
    assert logits.shape == (batch, ACTION_N)
    assert jnp.allclose(logits, ref, atol=1e-5, rtol=1e-5)

    # Non-multiple-of-8 batch (exercises batch-tail padding path).
    batch2 = 100
    x2 = jax.random.normal(kx2, (batch2, STATE_DIM), jnp.float32)
    logits2 = jax.block_until_ready(cem_forward(x2, w1, b1, w2, b2))
    ref2 = reference_forward(x2, w1, b1, w2, b2)
    assert logits2.shape == (batch2, ACTION_N)
    assert jnp.allclose(logits2, ref2, atol=1e-5, rtol=1e-5)

    print("KERNEL_OK")
</pallas_src>

<mosaic_0001>
module attributes {stable_mosaic.version = 11 : i64} {
  func.func @cem_forward_kernel(%arg0: i32, %arg1: memref<8x8xf32, #tpu.memory_space<vmem>>, %arg2: memref<8x256xf32, #tpu.memory_space<vmem>>, %arg3: memref<1x256xf32, #tpu.memory_space<vmem>>, %arg4: memref<256x4xf32, #tpu.memory_space<vmem>>, %arg5: memref<1x4xf32, #tpu.memory_space<vmem>>, %arg6: memref<8x4xf32, #tpu.memory_space<vmem>>) attributes {dimension_semantics = [#tpu.dimension_semantics<parallel>], iteration_bounds = array<i64: 1>, scalar_prefetch = 0 : i64, scratch_operands = 0 : i64, tpu.core_type = #tpu.core_type<tc>, window_params = [{transform_indices = @transform_0, window_bounds = array<i64: 8, 8>}, {pipeline_mode = #tpu.pipeline_mode<synchronous>, transform_indices = @transform_1, window_bounds = array<i64: 8, 256>}, {pipeline_mode = #tpu.pipeline_mode<synchronous>, transform_indices = @transform_2, window_bounds = array<i64: 1, 256>}, {pipeline_mode = #tpu.pipeline_mode<synchronous>, transform_indices = @transform_3, window_bounds = array<i64: 256, 4>}, {pipeline_mode = #tpu.pipeline_mode<synchronous>, transform_indices = @transform_4, window_bounds = array<i64: 1, 4>}, {transform_indices = @transform_5, window_bounds = array<i64: 8, 4>}]} {
    %c0 = arith.constant 0 : index
    %c0_0 = arith.constant 0 : index
    %0 = vector.load %arg1[%c0, %c0_0] : memref<8x8xf32, #tpu.memory_space<vmem>>, vector<8x8xf32>
    %c0_1 = arith.constant 0 : index
    %c0_2 = arith.constant 0 : index
    %1 = vector.load %arg2[%c0_1, %c0_2] : memref<8x256xf32, #tpu.memory_space<vmem>>, vector<8x256xf32>
    %cst = arith.constant dense<0.000000e+00> : vector<8x256xf32>
    %2 = tpu.matmul %0, %1, %cst {dimension_numbers = #tpu.dot_dimension_numbers<[1], [0], [0], [1], [0, 0, 1, 1], [], []>} : vector<8x8xf32>, vector<8x256xf32>, vector<8x256xf32> -> vector<8x256xf32>
    %c0_3 = arith.constant 0 : index
    %c0_4 = arith.constant 0 : index
    %3 = vector.load %arg3[%c0_3, %c0_4] : memref<1x256xf32, #tpu.memory_space<vmem>>, vector<1x256xf32>
    %4 = vector.broadcast %3 : vector<1x256xf32> to vector<8x256xf32>
    %5 = arith.addf %2, %4 : vector<8x256xf32>
    %cst_5 = arith.constant 0.000000e+00 : f32
    %6 = vector.broadcast %cst_5 : f32 to vector<8x256xf32>
    %7 = arith.maximumf %5, %6 : vector<8x256xf32>
    %c0_6 = arith.constant 0 : index
    %c0_7 = arith.constant 0 : index
    %8 = vector.load %arg4[%c0_6, %c0_7] : memref<256x4xf32, #tpu.memory_space<vmem>>, vector<256x4xf32>
    %cst_8 = arith.constant dense<0.000000e+00> : vector<8x4xf32>
    %9 = tpu.matmul %7, %8, %cst_8 {dimension_numbers = #tpu.dot_dimension_numbers<[1], [0], [0], [1], [0, 0, 1, 1], [], []>} : vector<8x256xf32>, vector<256x4xf32>, vector<8x4xf32> -> vector<8x4xf32>
    %c0_9 = arith.constant 0 : index
    %c0_10 = arith.constant 0 : index
    %10 = vector.load %arg5[%c0_9, %c0_10] : memref<1x4xf32, #tpu.memory_space<vmem>>, vector<1x4xf32>
    %11 = vector.broadcast %10 : vector<1x4xf32> to vector<8x4xf32>
    %12 = arith.addf %9, %11 : vector<8x4xf32>
    %c0_11 = arith.constant 0 : index
    %c0_12 = arith.constant 0 : index
    %13 = vector.load %arg6[%c0_11, %c0_12] : memref<8x4xf32, #tpu.memory_space<vmem>>, vector<8x4xf32>
    tpu.vector_store %arg6[%c0_11, %c0_12], %12 {strides = array<i32>} : memref<8x4xf32, #tpu.memory_space<vmem>>, vector<8x4xf32>,
    return
  }
  func.func @transform_0(%arg0: i32) -> (i32, i32) {
    %c0_i32 = arith.constant 0 : i32
    %c0_i32_0 = arith.constant 0 : i32
    return %arg0, %c0_i32 : i32, i32
  }
  func.func @transform_1(%arg0: i32) -> (i32, i32) {
    %c0_i32 = arith.constant 0 : i32
    %c0_i32_0 = arith.constant 0 : i32
    %c0_i32_1 = arith.constant 0 : i32
    return %c0_i32, %c0_i32_0 : i32, i32
  }
  func.func @transform_2(%arg0: i32) -> (i32, i32) {
    %c0_i32 = arith.constant 0 : i32
    %c0_i32_0 = arith.constant 0 : i32
    %c0_i32_1 = arith.constant 0 : i32
    return %c0_i32, %c0_i32_0 : i32, i32
  }
  func.func @transform_3(%arg0: i32) -> (i32, i32) {
    %c0_i32 = arith.constant 0 : i32
    %c0_i32_0 = arith.constant 0 : i32
    %c0_i32_1 = arith.constant 0 : i32
    return %c0_i32, %c0_i32_0 : i32, i32
  }
  func.func @transform_4(%arg0: i32) -> (i32, i32) {
    %c0_i32 = arith.constant 0 : i32
    %c0_i32_0 = arith.constant 0 : i32
    %c0_i32_1 = arith.constant 0 : i32
    return %c0_i32, %c0_i32_0 : i32, i32
  }
  func.func @transform_5(%arg0: i32) -> (i32, i32) {
    %c0_i32 = arith.constant 0 : i32
    %c0_i32_0 = arith.constant 0 : i32
    return %arg0, %c0_i32 : i32, i32
  }
}

</mosaic_0001>

<bundles_post_ra>
// kernel: tpu_custom_call.1
= control target key start
LH: loop header
LB: loop body
LE: loop exit
PB: predicated region body
PF: predicated region fallthrough
CT: control target
= control target key end

     0   :  { %v265_v2 = vmov 0.0   ;;  %vm35_vm0 = vcmask 64512   ;;  %v25_v36 = vlaneseq  ;;  %vm221_vm1 = vcmask 31744   ;;  %s410_s1 = inlined_call_operand.vmem [shape: f32[8,256], index: 1, kind: input, shape index: {}]   ;;  %s411_s0 = inlined_call_operand.vmem [shape: f32[8,8], index: 0, kind: input, shape index: {}]   ;;  %s412_s3 = inlined_call_operand.vmem [shape: f32[256,4], index: 3, kind: input, shape index: {}]   ;;  %s413_s2 = inlined_call_operand.vmem [shape: f32[1,256], index: 2, kind: input, shape index: {}]   ;;  %s414_s4 = inlined_call_operand.vmem [shape: f32[1,4], index: 4, kind: input, shape index: {}]   ;;  %s415_s5 = inlined_call_operand.vmem [shape: f32[8,4], index: 5, kind: output, shape index: {}]  }
   0x1   :  { %v22_v0 = vld [vmem:[%s410_s1 + $0x8] sm:$0xff]  ;;  %v21_v1 = vld [vmem:[%s410_s1] sm:$0xff]  ;;  %103 = vmatprep.mubr.f32.mxu0 %v265_v2  ;;  %v143_v4 = vld [vmem:[%s412_s3 + $0xf8] sm:$0xff] }
   0x2   :  { %v20_v3 = vld [vmem:[%s411_s0] sm:$0xff]  ;;  %69 = vmatprep.subr.mxu0 %v22_v0  ;;  %v127_v5 = vld [vmem:[%s412_s3 + $0x78] sm:$0xff]  ;;  %v142_v6 = vld [vmem:[%s412_s3 + $0xf0] sm:$0xff]  ;;  %229 = vmatprep.subr.mxu1 %v143_v4  ;;  %v26_v37 = vshrl.u32 %v25_v36, 7 }
   0x3   :  { %70 = vmatpush1.msra.mxu0 %v21_v1  ;;  %v126_v7 = vld [vmem:[%s412_s3 + $0x70] sm:$0xff]  ;;  %230 = vmatpush3.msra.mxu1 %v127_v5  ;;  %v141_v8 = vld [vmem:[%s412_s3 + $0xe8] sm:$0xff]  ;;  %v140_v10 = vld [vmem:[%s412_s3 + $0xe0] sm:$0xff] }
   0x4   :  { %227 = vmatmul.mubr.msk.f32.vlgmr.msra.gmra.mxu0 %vm35_vm0, %v20_v3  ;;  %231 = vmatprep.subr.mxu1 %v142_v6  ;;  %v125_v9 = vld [vmem:[%s412_s3 + $0x68] sm:$0xff]  ;;  %v124_v11 = vld [vmem:[%s412_s3 + $0x60] sm:$0xff]  ;;  %v139_v12 = vld [vmem:[%s412_s3 + $0xd8] sm:$0xff]  ;;  %v27_v38 = vsub.s32 0, %v26_v37  ;;  %v31_v40 = vsub.s32 1, %v26_v37 }
   0x5   :  { %232 = vmatpush3.msra.mxu1 %v126_v7  ;;  %v123_v13 = vld [vmem:[%s412_s3 + $0x58] sm:$0xff]  ;;  %v138_v14 = vld [vmem:[%s412_s3 + $0xd0] sm:$0xff]  ;;  %v137_v16 = vld [vmem:[%s412_s3 + $0xc8] sm:$0xff] }
   0x6   :  { %233 = vmatprep.subr.mxu1 %v141_v8  ;;  %v122_v15 = vld [vmem:[%s412_s3 + $0x50] sm:$0xff]  ;;  %v121_v17 = vld [vmem:[%s412_s3 + $0x48] sm:$0xff]  ;;  %v136_v18 = vld [vmem:[%s412_s3 + $0xc0] sm:$0xff] }
   0x7   :  { %234 = vmatpush3.msra.mxu1 %v125_v9  ;;  %v120_v19 = vld [vmem:[%s412_s3 + $0x40] sm:$0xff]  ;;  %v135_v20 = vld [vmem:[%s412_s3 + $0xb8] sm:$0xff]  ;;  %v134_v22 = vld [vmem:[%s412_s3 + $0xb0] sm:$0xff] }
   0x8   :  { %235 = vmatprep.subr.mxu1 %v140_v10  ;;  %v119_v21 = vld [vmem:[%s412_s3 + $0x38] sm:$0xff]  ;;  %v118_v23 = vld [vmem:[%s412_s3 + $0x30] sm:$0xff]  ;;  %v133_v24 = vld [vmem:[%s412_s3 + $0xa8] sm:$0xff] }
   0x9   :  { %236 = vmatpush3.msra.mxu1 %v124_v11  ;;  %v117_v25 = vld [vmem:[%s412_s3 + $0x28] sm:$0xff]  ;;  %v132_v26 = vld [vmem:[%s412_s3 + $0xa0] sm:$0xff]  ;;  %v131_v28 = vld [vmem:[%s412_s3 + $0x98] sm:$0xff] }
   0xa   :  { %237 = vmatprep.subr.mxu1 %v139_v12  ;;  %v116_v27 = vld [vmem:[%s412_s3 + $0x20] sm:$0xff]  ;;  %v115_v29 = vld [vmem:[%s412_s3 + $0x18] sm:$0xff]  ;;  %v130_v30 = vld [vmem:[%s412_s3 + $0x90] sm:$0xff] }
   0xb   :  { %238 = vmatpush3.msra.mxu1 %v123_v13  ;;  %v114_v31 = vld [vmem:[%s412_s3 + $0x10] sm:$0xff]  ;;  %v129_v32 = vld [vmem:[%s412_s3 + $0x88] sm:$0xff]  ;;  %v128_v34 = vld [vmem:[%s412_s3 + $0x80] sm:$0xff] }
   0xc   :  { %239 = vmatprep.subr.mxu1 %v138_v14  ;;  %v113_v33 = vld [vmem:[%s412_s3 + $0x8] sm:$0xff]  ;;  %v112_v35 = vld [vmem:[%s412_s3] sm:$0xff] }
   0xd   :  { %240 = vmatpush3.msra.mxu1 %v122_v15  ;;  %v23_v39 = vld [vmem:[%s413_s2] sm:$0x3] }
   0xe   :  { %241 = vmatprep.subr.mxu1 %v137_v16  ;;  %v28_v41 = vrot.slane %v23_v39, %v27_v38  ;;  %v32_v42 = vrot.slane %v23_v39, %v31_v40  ;;  %v228_v50 = vld [vmem:[%s414_s4] ss:$0 sm:$0xff] }
   0xf   :  { %242 = vmatpush3.msra.mxu1 %v121_v17 }
  0x10   :  { %243 = vmatprep.subr.mxu1 %v136_v18 }
  0x11   :  { %244 = vmatpush3.msra.mxu1 %v120_v19 }
  0x12   :  { %245 = vmatprep.subr.mxu1 %v135_v20 }
  0x13   :  { %246 = vmatpush3.msra.mxu1 %v119_v21 }
  0x14   :  { %247 = vmatprep.subr.mxu1 %v134_v22 }
  0x15   :  { %248 = vmatpush3.msra.mxu1 %v118_v23 }
  0x16   :  { %249 = vmatprep.subr.mxu1 %v133_v24 }
  0x17   :  { %250 = vmatpush3.msra.mxu1 %v117_v25 }
  0x18   :  { %251 = vmatprep.subr.mxu1 %v132_v26 }
  0x19   :  { %252 = vmatpush3.msra.mxu1 %v116_v27 }
  0x1a   :  { %253 = vmatprep.subr.mxu1 %v131_v28 }
  0x1b   :  { %254 = vmatpush3.msra.mxu1 %v115_v29 }
  0x1c   :  { %255 = vmatprep.subr.mxu1 %v130_v30 }
  0x1d   :  { %256 = vmatpush3.msra.mxu1 %v114_v31 }
  0x1e   :  { %257 = vmatprep.subr.mxu1 %v129_v32 }
  0x1f   :  { %258 = vmatpush3.msra.mxu1 %v113_v33 }
  0x20   :  { %259 = vmatprep.subr.mxu1 %v128_v34 }
  0x21   :  { %260 = vmatpush3.msra.mxu1 %v112_v35 }
  0xc4   :  { %v105_v43 = vpop.f32.mrf.mxu0 }
  0xc5   :  { %v106_v44 = vadd.f32 %v105_v43, %v28_v41 }
  0xc6   :  { %v107_v45 = vpop.f32.mrf.mxu0 }
  0xc7   :  { %v108_v46 = vadd.f32 %v107_v45, %v32_v42  ;;  %v110_v48 = vmax.f32 %v106_v44, 0.0 }
  0xc9   :  { %v111_v47 = vmax.f32 %v108_v46, 0.0 }
  0xcb   :  { %215 = vmatprep.mubr.f32.mxu1 %v111_v47 }
  0xcc   :  { %216 = vmatmul.mubr.f32.vlgmr.msra.gmra.mxu1 %v110_v48 }
 0x18c   :  { %v261_v49 = vpop.f32.mrf.mxu1 }
 0x18e   :  { %v262_v51 = vpop.f32.mrf.mxu1 }
 0x18f   :  { %v263_v52 = vadd.f32 %v262_v51, %v261_v49 }
 0x191   :  { %v218_v53 = vadd.f32 %v263_v52, %v228_v50 }
 0x193   :  { %222 = vst.msk [vmem:[%s415_s5] sm:$0xff] %vm221_vm1, %v218_v53 }

</bundles_post_ra>
